<compile_context>
chip_gen: v7x
topology: tpu7x:2x2x1
jax: 0.10.0
libtpu: 0.0.40
codegen_flags: <defaults>
</compile_context>

<pallas_src>
import functools

import jax
import jax.numpy as jnp
from jax import lax
from jax.experimental import pallas as pl
from jax.experimental.pallas import tpu as pltpu


def _round_up(a, b):
    return (a + b - 1) // b * b


# -----------------------------------------------------------------------------
# Fast path: cross cosine similarity on the MXU, norms fused, output = accumulator.
# -----------------------------------------------------------------------------
def _cross_cosine_kernel(x_ref, y_ref, o_ref, nx2_ref, ny2_ref, *, temp, eps):
    k = pl.program_id(2)

    @pl.when(k == 0)
    def _():
        o_ref[...] = jnp.zeros_like(o_ref)
        nx2_ref[...] = jnp.zeros_like(nx2_ref)
        ny2_ref[...] = jnp.zeros_like(ny2_ref)

    x = x_ref[...]
    y = y_ref[...]

    # MXU: (TM, TK) . (TN, TK)^T -> (TM, TN); accumulate directly into the
    # VMEM-resident f32 output block (its block index (i, j) is constant over k).
    o_ref[...] += lax.dot_general(
        x, y,
        dimension_numbers=(((1,), (1,)), ((), ())),
        preferred_element_type=jnp.float32,
    )

    # Fused squared-norm accumulators (saves a separate HBM pass over x and y).
    xf = x.astype(jnp.float32)
    yf = y.astype(jnp.float32)
    nx2_ref[...] += jnp.sum(xf * xf, axis=-1, keepdims=True)          # (TM, 1)
    ones_row = jnp.ones((1, yf.shape[-1]), dtype=jnp.float32)
    ny2_ref[...] += lax.dot_general(                                   # (1, TN), lane-native
        ones_row, yf * yf,
        dimension_numbers=(((1,), (1,)), ((), ())),
        preferred_element_type=jnp.float32,
    )

    @pl.when(k == pl.num_programs(2) - 1)
    def _():
        # max(||x||*||y||, eps)^2 * temp^2 -> single rsqrt (EUP) + one VPU multiply.
        denom2 = jnp.maximum(nx2_ref[...] * ny2_ref[...], eps * eps) * (temp * temp)
        o_ref[...] = o_ref[...] * lax.rsqrt(denom2)


def _pick_mxu_tile(n):
    # MXU-pass aligned tiles; small extents use the full dim (allowed for block dims).
    if n >= 512:
        return 512
    if n >= 256:
        return 256
    if n >= 128:
        return 128
    return n


def _cross_similarity(x2d, y2d, temp, eps, use_bf16_mxu=False):
    """out[i, j] = cos(x2d[i], y2d[j]) / temp ;  x2d:(A,H), y2d:(B,H)."""
    A, H = x2d.shape
    B = y2d.shape[0]

    # K tiling: single full-H block when small (no padding); otherwise lane-align + tile.
    if H <= 1536:
        TK, H_pad = H, H
    else:
        H_pad = _round_up(H, 128)
        TK = 512 if H_pad % 512 == 0 else (256 if H_pad % 256 == 0 else 128)
    if H_pad != H:
        x2d = jnp.pad(x2d, ((0, 0), (0, H_pad - H)))
        y2d = jnp.pad(y2d, ((0, 0), (0, H_pad - H)))

    # Use a common input dtype for the MXU; optional bf16 feed (v6e/v7x bf16-native MXU).
    common = jnp.result_type(x2d.dtype, y2d.dtype)
    if use_bf16_mxu and common == jnp.float32:
        common = jnp.bfloat16
    if x2d.dtype != common:
        x2d = x2d.astype(common)
    if y2d.dtype != common:
        y2d = y2d.astype(common)

    TM = _pick_mxu_tile(A)
    TN = _pick_mxu_tile(B)

    kernel = functools.partial(_cross_cosine_kernel, temp=float(temp), eps=float(eps))
    out = pl.pallas_call(
        kernel,
        out_shape=jax.ShapeDtypeStruct((A, B), jnp.float32),
        grid_spec=pltpu.PrefetchScalarGridSpec(
            num_scalar_prefetch=0,
            grid=(pl.cdiv(A, TM), pl.cdiv(B, TN), H_pad // TK),
            in_specs=[
                pl.BlockSpec((TM, TK), lambda i, j, k: (i, k)),
                pl.BlockSpec((TN, TK), lambda i, j, k: (j, k)),
            ],
            out_specs=pl.BlockSpec((TM, TN), lambda i, j, k: (i, j)),
            scratch_shapes=[
                pltpu.VMEM((TM, 1), jnp.float32),
                pltpu.VMEM((1, TN), jnp.float32),
            ],
        ),
        compiler_params=pltpu.CompilerParams(
            dimension_semantics=("parallel", "parallel", "arbitrary"),
            vmem_limit_bytes=32 * 1024 * 1024,
        ),
    )(x2d, y2d)
    return out


# -----------------------------------------------------------------------------
# Row-wise cosine similarity: full operand (R, P, H) vs small operand (1, P, H),
# where the small operand is reused across the R axis (covers equal shapes with R=1).
# -----------------------------------------------------------------------------
def _rowwise_cosine_kernel(x_ref, y_ref, o_ref, *, temp, eps):
    x = x_ref[...].astype(jnp.float32)   # (TR, TP, H)
    y = y_ref[...].astype(jnp.float32)   # (1,  TP, H) -- broadcast across TR, no HBM copy
    dot = jnp.sum(x * y, axis=-1, keepdims=True)
    nx2 = jnp.sum(x * x, axis=-1, keepdims=True)
    ny2 = jnp.sum(y * y, axis=-1, keepdims=True)
    denom2 = jnp.maximum(nx2 * ny2, eps * eps) * (temp * temp)
    o_ref[...] = (dot * lax.rsqrt(denom2)).astype(o_ref.dtype)


def _rowwise_similarity(full3, small2, temp, eps):
    """full3: (R, P, H), small2: (P, H) -> (R, P) cosine similarity / temp."""
    R, P, H = full3.shape
    row_bytes = H * 4
    # ~2 MiB small-operand tile / ~4 MiB full-operand tile: with double-buffering and
    # the three f32 elementwise temporaries this stays well under 32 MiB (v7x-safe),
    # and tile sizes land in the measured 85%+ HBM-roofline regime.
    if P * row_bytes <= (2 << 20):
        TP = P
    else:
        TP = max(8, ((2 << 20) // row_bytes) // 8 * 8)
    TR = max(1, min(R, (4 << 20) // max(1, TP * row_bytes)))
    # TODO(synk): for extremely large H (a single 8-row tile exceeding a few MiB) the
    # reduction over H should be chunked with an in-kernel fori_loop; not needed here.

    kernel = functools.partial(_rowwise_cosine_kernel, temp=float(temp), eps=float(eps))
    out = pl.pallas_call(
        kernel,
        out_shape=jax.ShapeDtypeStruct((R, P, 1), jnp.float32),
        grid_spec=pltpu.PrefetchScalarGridSpec(
            num_scalar_prefetch=0,
            # j (P tiles) outer, r (R tiles) inner: the small block index is constant
            # across r, so it is fetched once per P tile and reused for every R tile.
            grid=(pl.cdiv(P, TP), pl.cdiv(R, TR)),
            in_specs=[
                pl.BlockSpec((TR, TP, H), lambda j, r: (r, j, 0)),
                pl.BlockSpec((1, TP, H), lambda j, r: (0, j, 0)),
            ],
            out_specs=pl.BlockSpec((TR, TP, 1), lambda j, r: (r, j, 0)),
        ),
        compiler_params=pltpu.CompilerParams(
            dimension_semantics=("parallel", "parallel"),
            vmem_limit_bytes=32 * 1024 * 1024,
        ),
    )(full3, small2[None])
    return out[..., 0]   # (R, P)


# -----------------------------------------------------------------------------
# Broadcast-pattern analysis helpers.
# -----------------------------------------------------------------------------
def _pad_shape(shape, n):
    return (1,) * (n - len(shape)) + tuple(shape)


def _suffix_broadcast_period(op_shape, bshape):
    """If `op_shape` broadcasts into `bshape` purely by tiling over its missing/size-1
    leading dims (padded shape = (1,...,1, bshape[k:], ..., bshape[-1])), return
    P = prod(bshape[k:-1]) (its row period in the flattened broadcast). Else None."""
    n = len(bshape)
    ps = _pad_shape(op_shape, n)
    if ps[-1] != bshape[-1]:
        return None
    k = 0
    while k < n - 1 and ps[k] == 1:
        k += 1
    for i in range(k, n - 1):
        if ps[i] != bshape[i]:
            return None
    P = 1
    for i in range(k, n - 1):
        P *= bshape[i]
    return P


# -----------------------------------------------------------------------------
# Public wrapper: equivalent of Similarity(temp).forward(x, y).
# -----------------------------------------------------------------------------
def similarity(x, y, temp=0.05, eps=1e-8, use_bf16_mxu=False):
    out_dtype = jnp.result_type(x.dtype, y.dtype)
    bshape = jnp.broadcast_shapes(x.shape, y.shape)
    H = bshape[-1]
    lead_shape = bshape[:-1]

    # Degenerate sizes: empty output, or zero-length vectors (norms clamp to eps -> 0).
    if any(d == 0 for d in bshape):
        return jnp.zeros(lead_shape, out_dtype)

    # Cross fast path: SimCSE-style (A,1,H) x (1,B,H) (or swapped) -> (A,B) on the MXU.
    if x.ndim == 3 and y.ndim == 3 and x.shape[-1] == H and y.shape[-1] == H:
        if x.shape[1] == 1 and y.shape[0] == 1:
            out = _cross_similarity(x[:, 0, :], y[0], temp, eps, use_bf16_mxu)
            return out.astype(out_dtype)
        if x.shape[0] == 1 and y.shape[1] == 1:
            out = _cross_similarity(y[:, 0, :], x[0], temp, eps, use_bf16_mxu)
            return out.astype(out_dtype)

    M = 1
    for d in lead_shape:
        M *= d

    n = len(bshape)
    x_full = _pad_shape(x.shape, n) == tuple(bshape)
    y_full = _pad_shape(y.shape, n) == tuple(bshape)

    if x_full and y_full:
        # Equal broadcast shapes: plain row-wise kernel (R = 1), no materialization.
        out = _rowwise_similarity(x.reshape(1, M, H), y.reshape(M, H), temp, eps)
        return out.reshape(lead_shape).astype(out_dtype)

    if x_full or y_full:
        full, small = (x, y) if x_full else (y, x)
        P = _suffix_broadcast_period(small.shape, bshape)
        if P is not None:
            # One-sided leading-dim broadcast: reuse the small operand's rows per tile
            # via the index_map instead of materializing the broadcast in HBM.
            R = M // P
            out = _rowwise_similarity(full.reshape(R, P, H), small.reshape(P, H),
                                      temp, eps)
            return out.reshape(lead_shape).astype(out_dtype)

    # TODO(synk): remaining mixed / interleaved broadcast patterns still materialize the
    # broadcast in HBM before the row-wise kernel.
    xb = jnp.broadcast_to(x, bshape).reshape(M, H)
    yb = jnp.broadcast_to(y, bshape).reshape(M, H)
    out = _rowwise_similarity(xb.reshape(1, M, H), yb, temp, eps)
    return out.reshape(lead_shape).astype(out_dtype)


if __name__ == "__main__":
    key = jax.random.PRNGKey(0)
    kx, ky, ka, kb, kc, kd = jax.random.split(key, 6)

    def _ref(x, y, temp=0.05, eps=1e-8):
        bshape = jnp.broadcast_shapes(x.shape, y.shape)
        xb = jnp.broadcast_to(x, bshape)
        yb = jnp.broadcast_to(y, bshape)
        dot = jnp.sum(xb * yb, axis=-1)
        denom = jnp.maximum(jnp.linalg.norm(xb, axis=-1) * jnp.linalg.norm(yb, axis=-1), eps)
        return dot / denom / temp

    # 1) SimCSE-style usage: x (B,1,H) vs y (1,B,H) -> (B,B)  [MXU fast path]
    B, H = 8, 32
    x = jax.random.normal(kx, (B, 1, H), dtype=jnp.float32)
    y = jax.random.normal(ky, (1, B, H), dtype=jnp.float32)
    sim = similarity(x, y, temp=0.05)
    jax.block_until_ready(sim)
    assert sim.shape == (B, B)
    assert jnp.allclose(sim, _ref(x, y), atol=1e-3, rtol=1e-3)

    # 2) One-sided leading-dim broadcast: x (2,7,H) vs y (7,H) -> (2,7)  [no broadcast copy]
    a = jax.random.normal(ka, (2, 7, H), dtype=jnp.float32)
    b = jax.random.normal(kb, (7, H), dtype=jnp.float32)
    sim2 = similarity(a, b, temp=0.05)
    jax.block_until_ready(sim2)
    assert sim2.shape == (2, 7)
    assert jnp.allclose(sim2, _ref(a, b), atol=1e-3, rtol=1e-3)

    # 3) Equal shapes: x (4,H) vs y (4,H) -> (4,)  [plain row-wise path]
    c = jax.random.normal(kc, (4, H), dtype=jnp.float32)
    d = jax.random.normal(kd, (4, H), dtype=jnp.float32)
    sim3 = similarity(c, d, temp=0.05)
    jax.block_until_ready(sim3)
    assert sim3.shape == (4,)
    assert jnp.allclose(sim3, _ref(c, d), atol=1e-3, rtol=1e-3)

    print("KERNEL_OK")
</pallas_src>

<mosaic_0001>
module attributes {stable_mosaic.version = 11 : i64} {
  func.func @_cross_cosine_kernel(%arg0: i32, %arg1: i32, %arg2: i32, %arg3: memref<8x32xf32, #tpu.memory_space<vmem>>, %arg4: memref<8x32xf32, #tpu.memory_space<vmem>>, %arg5: memref<8x8xf32, #tpu.memory_space<vmem>>, %arg6: memref<8x1xf32, #tpu.memory_space<vmem>>, %arg7: memref<1x8xf32, #tpu.memory_space<vmem>>) attributes {dimension_semantics = [#tpu.dimension_semantics<parallel>, #tpu.dimension_semantics<parallel>, #tpu.dimension_semantics<arbitrary>], iteration_bounds = array<i64: 1, 1, 1>, scalar_prefetch = 0 : i64, scratch_operands = 2 : i64, tpu.core_type = #tpu.core_type<tc>, window_params = [{transform_indices = @transform_0, window_bounds = array<i64: 8, 32>}, {transform_indices = @transform_1, window_bounds = array<i64: 8, 32>}, {transform_indices = @transform_2, window_bounds = array<i64: 8, 8>}]} {
    %c0_i32 = arith.constant 0 : i32
    %0 = arith.cmpi eq, %arg2, %c0_i32 : i32
    %1 = arith.extui %0 : i1 to i32
    %c0_i32_0 = arith.constant 0 : i32
    %2 = arith.cmpi ne, %1, %c0_i32_0 : i32
    scf.if %2 {
      %cst_21 = arith.constant 0.000000e+00 : f32
      %24 = vector.broadcast %cst_21 : f32 to vector<8x8xf32>
      %c0_22 = arith.constant 0 : index
      %c0_23 = arith.constant 0 : index
      %25 = vector.load %arg5[%c0_22, %c0_23] : memref<8x8xf32, #tpu.memory_space<vmem>>, vector<8x8xf32>
      tpu.vector_store %arg5[%c0_22, %c0_23], %24 {strides = array<i32>} : memref<8x8xf32, #tpu.memory_space<vmem>>, vector<8x8xf32>,
      %cst_24 = arith.constant 0.000000e+00 : f32
      %26 = vector.broadcast %cst_24 : f32 to vector<8x1xf32>
      %c0_25 = arith.constant 0 : index
      %c0_26 = arith.constant 0 : index
      %27 = vector.load %arg6[%c0_25, %c0_26] : memref<8x1xf32, #tpu.memory_space<vmem>>, vector<8x1xf32>
      tpu.vector_store %arg6[%c0_25, %c0_26], %26 {strides = array<i32>} : memref<8x1xf32, #tpu.memory_space<vmem>>, vector<8x1xf32>,
      %cst_27 = arith.constant 0.000000e+00 : f32
      %28 = vector.broadcast %cst_27 : f32 to vector<1x8xf32>
      %c0_28 = arith.constant 0 : index
      %c0_29 = arith.constant 0 : index
      %29 = vector.load %arg7[%c0_28, %c0_29] : memref<1x8xf32, #tpu.memory_space<vmem>>, vector<1x8xf32>
      tpu.vector_store %arg7[%c0_28, %c0_29], %28 {strides = array<i32>} : memref<1x8xf32, #tpu.memory_space<vmem>>, vector<1x8xf32>,
    } else {
    }
    %c0 = arith.constant 0 : index
    %c0_1 = arith.constant 0 : index
    %3 = vector.load %arg3[%c0, %c0_1] : memref<8x32xf32, #tpu.memory_space<vmem>>, vector<8x32xf32>
    %c0_2 = arith.constant 0 : index
    %c0_3 = arith.constant 0 : index
    %4 = vector.load %arg4[%c0_2, %c0_3] : memref<8x32xf32, #tpu.memory_space<vmem>>, vector<8x32xf32>
    %c0_4 = arith.constant 0 : index
    %c0_5 = arith.constant 0 : index
    %5 = vector.load %arg5[%c0_4, %c0_5] : memref<8x8xf32, #tpu.memory_space<vmem>>, vector<8x8xf32>
    %cst = arith.constant dense<0.000000e+00> : vector<8x8xf32>
    %6 = tpu.matmul %3, %4, %cst {dimension_numbers = #tpu.dot_dimension_numbers<[1], [1], [0], [0], [0, 0, 1, 0], [], []>} : vector<8x32xf32>, vector<8x32xf32>, vector<8x8xf32> -> vector<8x8xf32>
    %7 = arith.addf %5, %6 : vector<8x8xf32>
    %c0_6 = arith.constant 0 : index
    %c0_7 = arith.constant 0 : index
    %8 = vector.load %arg5[%c0_6, %c0_7] : memref<8x8xf32, #tpu.memory_space<vmem>>, vector<8x8xf32>
    tpu.vector_store %arg5[%c0_6, %c0_7], %7 {strides = array<i32>} : memref<8x8xf32, #tpu.memory_space<vmem>>, vector<8x8xf32>,
    %c0_8 = arith.constant 0 : index
    %c0_9 = arith.constant 0 : index
    %9 = vector.load %arg6[%c0_8, %c0_9] : memref<8x1xf32, #tpu.memory_space<vmem>>, vector<8x1xf32>
    %10 = arith.mulf %3, %3 : vector<8x32xf32>
    %cst_10 = arith.constant dense<0.000000e+00> : vector<8xf32>
    %11 = vector.multi_reduction <add>, %10, %cst_10 [1] : vector<8x32xf32> to vector<8xf32>
    %12 = vector.shape_cast %11 : vector<8xf32> to vector<8x1xf32>
    %13 = arith.addf %9, %12 : vector<8x1xf32>
    %c0_11 = arith.constant 0 : index
    %c0_12 = arith.constant 0 : index
    %14 = vector.load %arg6[%c0_11, %c0_12] : memref<8x1xf32, #tpu.memory_space<vmem>>, vector<8x1xf32>
    tpu.vector_store %arg6[%c0_11, %c0_12], %13 {strides = array<i32>} : memref<8x1xf32, #tpu.memory_space<vmem>>, vector<8x1xf32>,
    %cst_13 = arith.constant 1.000000e+00 : f32
    %15 = vector.broadcast %cst_13 : f32 to vector<1x32xf32>
    %c0_14 = arith.constant 0 : index
    %c0_15 = arith.constant 0 : index
    %16 = vector.load %arg7[%c0_14, %c0_15] : memref<1x8xf32, #tpu.memory_space<vmem>>, vector<1x8xf32>
    %17 = arith.mulf %4, %4 : vector<8x32xf32>
    %cst_16 = arith.constant dense<0.000000e+00> : vector<1x8xf32>
    %18 = tpu.matmul %15, %17, %cst_16 {dimension_numbers = #tpu.dot_dimension_numbers<[1], [1], [0], [0], [0, 0, 1, 0], [], []>} : vector<1x32xf32>, vector<8x32xf32>, vector<1x8xf32> -> vector<1x8xf32>
    %19 = arith.addf %16, %18 : vector<1x8xf32>
    %c0_17 = arith.constant 0 : index
    %c0_18 = arith.constant 0 : index
    %20 = vector.load %arg7[%c0_17, %c0_18] : memref<1x8xf32, #tpu.memory_space<vmem>>, vector<1x8xf32>
    tpu.vector_store %arg7[%c0_17, %c0_18], %19 {strides = array<i32>} : memref<1x8xf32, #tpu.memory_space<vmem>>, vector<1x8xf32>,
    %c0_i32_19 = arith.constant 0 : i32
    %21 = arith.cmpi eq, %arg2, %c0_i32_19 : i32
    %22 = arith.extui %21 : i1 to i32
    %c0_i32_20 = arith.constant 0 : i32
    %23 = arith.cmpi ne, %22, %c0_i32_20 : i32
    scf.if %23 {
      %c0_21 = arith.constant 0 : index
      %c0_22 = arith.constant 0 : index
      %24 = vector.load %arg6[%c0_21, %c0_22] : memref<8x1xf32, #tpu.memory_space<vmem>>, vector<8x1xf32>
      %c0_23 = arith.constant 0 : index
      %c0_24 = arith.constant 0 : index
      %25 = vector.load %arg7[%c0_23, %c0_24] : memref<1x8xf32, #tpu.memory_space<vmem>>, vector<1x8xf32>
      %26 = vector.broadcast %24 : vector<8x1xf32> to vector<8x8xf32>
      %27 = vector.broadcast %25 : vector<1x8xf32> to vector<8x8xf32>
      %28 = arith.mulf %26, %27 : vector<8x8xf32>
      %cst_25 = arith.constant 1.000000e-16 : f32
      %29 = vector.broadcast %cst_25 : f32 to vector<8x8xf32>
      %30 = arith.maximumf %28, %29 : vector<8x8xf32>
      %cst_26 = arith.constant 2.500000e-03 : f32
      %31 = vector.broadcast %cst_26 : f32 to vector<8x8xf32>
      %32 = arith.mulf %30, %31 : vector<8x8xf32>
      %c0_27 = arith.constant 0 : index
      %c0_28 = arith.constant 0 : index
      %33 = vector.load %arg5[%c0_27, %c0_28] : memref<8x8xf32, #tpu.memory_space<vmem>>, vector<8x8xf32>
      %34 = math.rsqrt %32 : vector<8x8xf32>
      %35 = arith.mulf %33, %34 : vector<8x8xf32>
      %c0_29 = arith.constant 0 : index
      %c0_30 = arith.constant 0 : index
      %36 = vector.load %arg5[%c0_29, %c0_30] : memref<8x8xf32, #tpu.memory_space<vmem>>, vector<8x8xf32>
      tpu.vector_store %arg5[%c0_29, %c0_30], %35 {strides = array<i32>} : memref<8x8xf32, #tpu.memory_space<vmem>>, vector<8x8xf32>,
    } else {
    }
    return
  }
  func.func @transform_0(%arg0: i32, %arg1: i32, %arg2: i32) -> (i32, i32) {
    %c0_i32 = arith.constant 0 : i32
    return %arg0, %arg2 : i32, i32
  }
  func.func @transform_1(%arg0: i32, %arg1: i32, %arg2: i32) -> (i32, i32) {
    %c0_i32 = arith.constant 0 : i32
    return %arg1, %arg2 : i32, i32
  }
  func.func @transform_2(%arg0: i32, %arg1: i32, %arg2: i32) -> (i32, i32) {
    %c0_i32 = arith.constant 0 : i32
    return %arg0, %arg1 : i32, i32
  }
}

</mosaic_0001>

<bundles_post_ra>
// kernel: tpu_custom_call.1
= control target key start
LH: loop header
LB: loop body
LE: loop exit
PB: predicated region body
PF: predicated region fallthrough
CT: control target
= control target key end

     0   :  { %7 = vsyncpa [#allocation5], 0  ;;  %s423_s0 = inlined_call_operand.hbm [shape: f32[8,32], index: 0, kind: input, shape index: {}]   ;;  %s424_s1 = inlined_call_operand.hbm [shape: f32[8,32], index: 1, kind: input, shape index: {}]   ;;  %s425_s2 = inlined_call_operand.hbm [shape: f32[8,8], index: 2, kind: output, shape index: {}]  }
   0x1   :  { %8 = vsyncpa [#allocation8], 0 }
   0x2   :  { %9 = vsyncpa [#allocation6], 0  ;;  %s358_s9 = smov [#allocation4]   ;;  %s359_s11 = smov [#allocation7]  }
   0x3   :  { %s16_s10 = sshll.u32 %s358_s9, 4  ;;  %s26_s12 = sshll.u32 %s359_s11, 4  ;;  %s17_s10 = int_to_ptr.vmem [resolvable:$true] %s16_s10  ;;  %s27_s12 = int_to_ptr.vmem [resolvable:$true] %s26_s12 }
   0x4   :  { %s286_s15 = scalar_lea.hbm %s423_s0, 128 }
   0x5   :  { %p287_p0 = scmp.ne.s32.totalorder %s423_s0, %s286_s15  ;;  %p290_p1 = scmp.lt.u32.totalorder %s286_s15, %s423_s0 }
   0x7   :  { %p292_p2 = pnand %p290_p1, %p287_p0 }
   0x9   :  { %295 = shalt.err (!%p292_p2)
}
   0xa   :  { %s296_s20 = scalar_lea.vmem %s17_s10, 128  ;;  %p301_p4 = scmp.lt.s32.totalorder %s17_s10, %s17_s10 }
   0xb   :  { %p297_p3 = scmp.ne.s32.totalorder %s17_s10, %s296_s20  ;;  %p302_p5 = scmp.lt.s32.totalorder %s296_s20, %s296_s20 }
   0xd   :  { %p303_p6 = por %p302_p5, %p301_p4 }
   0xf   :  { %p304_p7 = pnand %p303_p6, %p297_p3 }
  0x11   :  { %307 = shalt.err (!%p304_p7)
}
  0x12   :  { %19 = dma.hbm_to_vmem [thread:$0]  %s423_s0, 128, %s17_s10, [#allocation5]  }
  0x13   :  { %s308_s25 = scalar_lea.hbm %s424_s1, 128 }
  0x14   :  { %p309_p8 = scmp.ne.s32.totalorder %s424_s1, %s308_s25  ;;  %p312_p9 = scmp.lt.u32.totalorder %s308_s25, %s424_s1 }
  0x16   :  { %p314_p10 = pnand %p312_p9, %p309_p8 }
  0x18   :  { %317 = shalt.err (!%p314_p10)
}
  0x19   :  { %s318_s30 = scalar_lea.vmem %s27_s12, 128  ;;  %p323_p12 = scmp.lt.s32.totalorder %s27_s12, %s27_s12 }
  0x1a   :  { %p319_p11 = scmp.ne.s32.totalorder %s27_s12, %s318_s30  ;;  %p324_p13 = scmp.lt.s32.totalorder %s318_s30, %s318_s30 }
  0x1c   :  { %p325_p0 = por %p324_p13, %p323_p12 }
  0x1e   :  { %p326_p1 = pnand %p325_p0, %p319_p11 }
  0x20   :  { %329 = shalt.err (!%p326_p1)
}
  0x21   :  { %29 = dma.hbm_to_vmem [thread:$0]  %s424_s1, 128, %s27_s12, [#allocation8]  }
  0x22   :  { %352 = dma.done.wait [#allocation5], 128  }
  0x23   :  { %353 = vsyncadd [#allocation5], 4294967168 }
  0x24   :  { %354 = dma.done.wait [#allocation8], 128  }
  0x25   :  { %355 = vsyncadd [#allocation8], 4294967168  ;;  %v360_v0 = vmov 0.0   ;;  %vm361_vm0 = vmmov 0   ;;  %vm42_vm1 = vcmask 7168   ;;  %v46_v1 = vld [vmem:[#allocation4] sm:$0xff] }
  0x26   :  { %271 = vmatprep.subr.mxu1 %v360_v0  ;;  %273 = vmatprep.mubr.msk.f32.mxu1 %vm361_vm0, %v360_v0  ;;  %43 = vst.msk [vmem:[#allocation2] sm:$0xff] %vm42_vm1, %v360_v0  ;;  %vm49_vm2 = vcmask 261120   ;;  %v47_v2 = vld [vmem:[#allocation7] sm:$0xff]  ;;  %v130_v3 = vmul.f32 %v46_v1, %v46_v1  ;;  %v362_v6 = vmov 1.0   ;;  %v363_v7 = vmov 0   ;;  %s364_s1 = smov [#allocation9]  }
  0x27   :  { %266 = vmatprep.subr.mxu0 %v360_v0  ;;  %268 = vmatprep.mubr.msk.f32.mxu0 %vm361_vm0, %v360_v0  ;;  %v138_v4 = vmul.f32 %v47_v2, %v47_v2  ;;  %vm44_vm3 = vcmask 57344   ;;  %vm40_vm4 = vcmask 64512   ;;  %s247_s4 = sshll.u32 %s364_s1, 4  ;;  %s248_s4 = int_to_ptr.vmem [resolvable:$true] %s247_s4 }
  0x28   :  { %267 = vmatpush3.xpose.msk.msra.mxu0 %vm49_vm2, %v47_v2  ;;  %v131_v5 = vsel %vm49_vm2, %v130_v3, 0.0  ;;  %283 = vset.pattern.permute.xlu0 %v363_v7  ;;  %45 = vst.msk [vmem:[#allocation3] sm:$0x1] %vm44_vm3, %v360_v0  ;;  %s330_s5 = scalar_lea.vmem %s248_s4, 128  ;;  %p335_p3 = scmp.lt.s32.totalorder %s248_s4, %s248_s4 }
  0x29   :  { %272 = vmatpush3.xpose.msk.msra.mxu1 %vm49_vm2, %v138_v4  ;;  %132 = vadd.xlane.f32.xlu0 %v131_v5  ;;  %41 = vst.msk [vmem:[#allocation9] sm:$0xff] %vm40_vm4, %v360_v0  ;;  %p331_p2 = scmp.ne.s32.totalorder %s248_s4, %s330_s5  ;;  %p336_p4 = scmp.lt.s32.totalorder %s330_s5, %s330_s5 }
  0x2b   :  { %269 = vmatmul.mubr.msk.f32.vlgmr.msra.gmra.mrb[0].mxu0 %vm49_vm2, %v46_v1  ;;  %p337_p5 = por %p336_p4, %p335_p3 }
  0x2c   :  { %274 = vmatmul.mubr.msk.f32.vlgmr.msra.gmra.mrb[0].mxu1 %vm49_vm2, %v362_v6 }
  0x2d   :  { %v129_v8 = vld [vmem:[#allocation2] sm:$0xff]  ;;  %p338_p6 = pnand %p337_p5, %p331_p2 }
  0x2f   :  { %v137_v13 = vld [vmem:[#allocation3] sm:$0x1] }
  0x30   :  { %v48_v12 = vld [vmem:[#allocation9] sm:$0xff] }
  0xb6   :  { %v133_v9 = vpop.xlane.xlu0 %132 }
  0xb7   :  { %v134_v10 = vadd.f32 %v133_v9, %v129_v8 }
  0xb9   :  { %136 = vst.msk [vmem:[#allocation2] sm:$0xff] %vm42_vm1, %v134_v10 }
  0xc0   :  { %v221_v11 = vld [vmem:[#allocation2] sm:$0xff] }
  0xc1   :  { %225 = vperm.xlu0 %283, %v221_v11  }
  0xfe   :  { %v122_v14 = vpop.f32.mrb[0].mxu0 }
  0xff   :  { %v126_v15 = vadd.f32 %v122_v14, %v48_v12  ;;  %v270_v16 = vpop.f32.mrb[1].mxu0  ;;  %v211_v17 = vpop.f32.mrb[0].mxu1 }
 0x100   :  { %v215_v18 = vadd.f32 %v211_v17, %v137_v13  ;;  %v275_v19 = vpop.f32.mrb[1].mxu1 }
 0x101   :  { %128 = vst.msk [vmem:[#allocation9] sm:$0xff] %vm40_vm4, %v126_v15 }
 0x102   :  { %217 = vst.msk [vmem:[#allocation3] sm:$0x1] %vm44_vm3, %v215_v18 }
 0x108   :  { %v237_v25 = vld [vmem:[#allocation9] sm:$0xff] }
 0x109   :  { %v261_v20 = vld [vmem:[#allocation3] ss:$0 sm:$0xff] }
 0x140   :  { %v226_v21 = vpop.permute.xlu0 %225 }
 0x141   :  { %v234_v22 = vmul.f32 %v261_v20, %v226_v21 }
 0x143   :  { %v235_v23 = vmax.f32 %v234_v22, 1e-16 }
 0x145   :  { %v236_v24 = vmul.f32 0.0025, %v235_v23 }
 0x147   :  { %284 = vrsqrt.f32 %v236_v24 }
 0x151   :  { %v285_v26 = vpop.eup %284 }
 0x152   :  { %v239_v27 = vmul.f32 %v285_v26, %v237_v25 }
 0x154   :  { %240 = vst.msk [vmem:[#allocation9] sm:$0xff] %vm40_vm4, %v239_v27 }
 0x155   :  { %341 = shalt.err (!%p338_p6)
}
 0x156   :  { %s342_s8 = scalar_lea.hbm %s425_s2, 128 }
 0x157   :  { %p343_p7 = scmp.ne.s32.totalorder %s425_s2, %s342_s8  ;;  %p346_p8 = scmp.lt.u32.totalorder %s342_s8, %s425_s2 }
 0x159   :  { %p348_p9 = pnand %p346_p8, %p343_p7 }
 0x15b   :  { %351 = shalt.err (!%p348_p9)
}
 0x15c   :  { %250 = dma.vmem_to_hbm [thread:$0]  %s248_s4, 128, %s425_s2, [#allocation6]  }
 0x15d   :  { %356 = dma.done.wait [#allocation6], 128  }
 0x15e   :  { %357 = vsyncadd [#allocation6], 4294967168 }
 0x15f   :  { %254 = vsyncpa [#allocation5], 1 }
 0x160   :  { %255 = vsyncpa [#allocation8], 1 }
 0x161   :  { %256 = vsyncpa [#allocation6], 1 }

</bundles_post_ra>
